<compile_context>
chip_gen: v7x
topology: tpu7x:2x2x1
jax: 0.10.0
libtpu: 0.0.40
codegen_flags: <defaults>
</compile_context>

<pallas_src>
import math

import jax
import jax.numpy as jnp
from jax.experimental import pallas as pl
from jax.experimental.pallas import tpu as pltpu

IN_DIM = 12
OUT_DIM = 6
DROPOUT_P = 0.2
SCALE = 1.0 / math.sqrt(IN_DIM)
# keep element iff uniform u >= p  <=>  uint32 bits >= p * 2^32
KEEP_THRESHOLD = int(DROPOUT_P * (1 << 32))   # 858993459
INV_KEEP = 1.0 / (1.0 - DROPOUT_P)


def sdpa_dropout_kernel(q_ref, kt_ref, v_ref, bits_ref, o_ref):
    # Per-batch blocks (leading batch dim squeezed by the BlockSpec):
    #   q_ref:    (Lq, D)     kt_ref: (D, Lk)     v_ref: (Lk, Dv)
    #   bits_ref: (Lq, Lk)    o_ref:  (Lq, Dv)
    q = q_ref[...].astype(jnp.float32) * jnp.float32(SCALE)      # scale folded into q
    kt = kt_ref[...].astype(jnp.float32)
    v = v_ref[...].astype(jnp.float32)

    # scores = (q / sqrt(d)) @ k^T  -> (Lq, Lk)
    s = jnp.dot(q, kt, preferred_element_type=jnp.float32)

    # numerically-stable softmax numerator; denominator folded into the output
    m = jnp.max(s, axis=-1, keepdims=True)
    e = jnp.exp(s - m)
    denom = jnp.sum(e, axis=-1, keepdims=True)                   # (Lq, 1)

    # dropout mask in the integer domain: P(keep) = 1 - p
    keep = bits_ref[...] >= jnp.uint32(KEEP_THRESHOLD)
    pd = jnp.where(keep, e, jnp.float32(0.0))                    # unnormalized, masked probs

    # output = (masked e) @ v, then normalize + 1/(1-p) rescale on the tiny (Lq, Dv) tile
    out = jnp.dot(pd, v, preferred_element_type=jnp.float32)
    o_ref[...] = (out * (jnp.float32(INV_KEEP) / denom)).astype(o_ref.dtype)


def sdpa_attention(query, key, value, rng_key=None):
    """query: (B, Lq, D), key: (B, Lk, D), value: (B, Lk, Dv) -> (B, Lq, Dv)."""
    B, Lq, D = query.shape
    _, Lk, Dv = value.shape

    # One-time transpose outside the kernel: (B, D, Lk) so the kernel matmul is NN.
    kT = jnp.swapaxes(key, -1, -2)

    if rng_key is None:
        rng_key = jax.random.PRNGKey(0)
    # Independent dropout bits per batch element (no shared mask across the grid).
    bits = jax.random.bits(rng_key, (B, Lq, Lk), dtype=jnp.uint32)

    out = pl.pallas_call(
        sdpa_dropout_kernel,
        out_shape=jax.ShapeDtypeStruct((B, Lq, Dv), jnp.float32),
        grid=(B,),
        in_specs=[
            pl.BlockSpec((None, Lq, D), lambda b: (b, 0, 0)),    # q
            pl.BlockSpec((None, D, Lk), lambda b: (b, 0, 0)),    # k^T
            pl.BlockSpec((None, Lk, Dv), lambda b: (b, 0, 0)),   # v
            pl.BlockSpec((None, Lq, Lk), lambda b: (b, 0, 0)),   # dropout bits
        ],
        out_specs=pl.BlockSpec((None, Lq, Dv), lambda b: (b, 0, 0)),
        compiler_params=pltpu.CompilerParams(
            dimension_semantics=("parallel",)),                  # 2x on v7x (2 TCs)
    )(query, kT, value, bits)

    return out


if __name__ == "__main__":
    root = jax.random.PRNGKey(0)
    kq, kk, kv, kd = jax.random.split(root, 4)

    # Shapes implied by the module's example inputs.
    query = jax.random.normal(kq, (1, 1, IN_DIM), dtype=jnp.float32)
    key = jax.random.normal(kk, (1, 100, IN_DIM), dtype=jnp.float32)
    value = jax.random.normal(kv, (1, 100, OUT_DIM), dtype=jnp.float32)

    out = sdpa_attention(query, key, value, rng_key=kd)
    jax.block_until_ready(out)
    assert out.shape == (1, 1, OUT_DIM), out.shape
    assert bool(jnp.all(jnp.isfinite(out)))
    print("KERNEL_OK")
</pallas_src>

<mosaic_0001>
module attributes {stable_mosaic.version = 11 : i64} {
  func.func @sdpa_dropout_kernel(%arg0: i32, %arg1: memref<1x1x12xf32, #tpu.memory_space<vmem>>, %arg2: memref<1x12x100xf32, #tpu.memory_space<vmem>>, %arg3: memref<1x100x6xf32, #tpu.memory_space<vmem>>, %arg4: memref<1x1x100xi32, #tpu.memory_space<vmem>>, %arg5: memref<1x1x6xf32, #tpu.memory_space<vmem>>) attributes {dimension_semantics = [#tpu.dimension_semantics<parallel>], iteration_bounds = array<i64: 1>, scalar_prefetch = 0 : i64, scratch_operands = 0 : i64, tpu.core_type = #tpu.core_type<tc>, window_params = [{transform_indices = @transform_0, window_bounds = array<i64: 1, 1, 12>}, {transform_indices = @transform_1, window_bounds = array<i64: 1, 12, 100>}, {transform_indices = @transform_2, window_bounds = array<i64: 1, 100, 6>}, {transform_indices = @transform_3, window_bounds = array<i64: 1, 1, 100>}, {transform_indices = @transform_4, window_bounds = array<i64: 1, 1, 6>}]} {
    %c0 = arith.constant 0 : index
    %c0_0 = arith.constant 0 : index
    %c0_1 = arith.constant 0 : index
    %0 = vector.load %arg1[%c0, %c0_0, %c0_1] : memref<1x1x12xf32, #tpu.memory_space<vmem>>, vector<1x1x12xf32>
    %1 = vector.shape_cast %0 : vector<1x1x12xf32> to vector<1x12xf32>
    %cst = arith.constant 0.288675129 : f32
    %2 = vector.broadcast %cst : f32 to vector<1x12xf32>
    %3 = arith.mulf %1, %2 : vector<1x12xf32>
    %c0_2 = arith.constant 0 : index
    %c0_3 = arith.constant 0 : index
    %c0_4 = arith.constant 0 : index
    %4 = vector.load %arg2[%c0_2, %c0_3, %c0_4] : memref<1x12x100xf32, #tpu.memory_space<vmem>>, vector<1x12x100xf32>
    %5 = vector.shape_cast %4 : vector<1x12x100xf32> to vector<12x100xf32>
    %c0_5 = arith.constant 0 : index
    %c0_6 = arith.constant 0 : index
    %c0_7 = arith.constant 0 : index
    %6 = vector.load %arg3[%c0_5, %c0_6, %c0_7] : memref<1x100x6xf32, #tpu.memory_space<vmem>>, vector<1x100x6xf32>
    %7 = vector.shape_cast %6 : vector<1x100x6xf32> to vector<100x6xf32>
    %cst_8 = arith.constant dense<0.000000e+00> : vector<1x100xf32>
    %8 = tpu.matmul %3, %5, %cst_8 {dimension_numbers = #tpu.dot_dimension_numbers<[1], [0], [0], [1], [0, 0, 1, 1], [], []>} : vector<1x12xf32>, vector<12x100xf32>, vector<1x100xf32> -> vector<1x100xf32>
    %cst_9 = arith.constant dense<0xFF800000> : vector<1xf32>
    %9 = vector.multi_reduction <maximumf>, %8, %cst_9 [1] : vector<1x100xf32> to vector<1xf32>
    %10 = vector.shape_cast %9 : vector<1xf32> to vector<1x1xf32>
    %11 = vector.broadcast %10 : vector<1x1xf32> to vector<1x100xf32>
    %12 = arith.subf %8, %11 : vector<1x100xf32>
    %13 = math.exp %12 : vector<1x100xf32>
    %cst_10 = arith.constant dense<0.000000e+00> : vector<1xf32>
    %14 = vector.multi_reduction <add>, %13, %cst_10 [1] : vector<1x100xf32> to vector<1xf32>
    %15 = vector.shape_cast %14 : vector<1xf32> to vector<1x1xf32>
    %c0_11 = arith.constant 0 : index
    %c0_12 = arith.constant 0 : index
    %c0_13 = arith.constant 0 : index
    %16 = vector.load %arg4[%c0_11, %c0_12, %c0_13] : memref<1x1x100xi32, #tpu.memory_space<vmem>>, vector<1x1x100xi32>
    %17 = vector.shape_cast %16 : vector<1x1x100xi32> to vector<1x100xi32>
    %c858993459_i32 = arith.constant 858993459 : i32
    %18 = vector.broadcast %c858993459_i32 : i32 to vector<1x100xi32>
    %19 = arith.cmpi uge, %17, %18 : vector<1x100xi32>
    %cst_14 = arith.constant 0.000000e+00 : f32
    %20 = vector.broadcast %cst_14 : f32 to vector<1x100xf32>
    %21 = arith.select %19, %13, %20 : vector<1x100xi1>, vector<1x100xf32>
    %cst_15 = arith.constant dense<0.000000e+00> : vector<1x6xf32>
    %22 = tpu.matmul %21, %7, %cst_15 {dimension_numbers = #tpu.dot_dimension_numbers<[1], [0], [0], [1], [0, 0, 1, 1], [], []>} : vector<1x100xf32>, vector<100x6xf32>, vector<1x6xf32> -> vector<1x6xf32>
    %cst_16 = arith.constant 1.250000e+00 : f32
    %23 = vector.broadcast %cst_16 : f32 to vector<1x1xf32>
    %24 = arith.divf %23, %15 : vector<1x1xf32>
    %25 = vector.broadcast %24 : vector<1x1xf32> to vector<1x6xf32>
    %26 = arith.mulf %22, %25 : vector<1x6xf32>
    %c0_17 = arith.constant 0 : index
    %c0_18 = arith.constant 0 : index
    %c0_19 = arith.constant 0 : index
    %27 = vector.load %arg5[%c0_17, %c0_18, %c0_19] : memref<1x1x6xf32, #tpu.memory_space<vmem>>, vector<1x1x6xf32>
    %28 = vector.shape_cast %27 : vector<1x1x6xf32> to vector<1x6xf32>
    %29 = vector.shape_cast %26 : vector<1x6xf32> to vector<1x1x6xf32>
    tpu.vector_store %arg5[%c0_17, %c0_18, %c0_19], %29 {strides = array<i32>} : memref<1x1x6xf32, #tpu.memory_space<vmem>>, vector<1x1x6xf32>,
    return
  }
  func.func @transform_0(%arg0: i32) -> (i32, i32, i32) {
    %c0_i32 = arith.constant 0 : i32
    %c0_i32_0 = arith.constant 0 : i32
    %c0_i32_1 = arith.constant 0 : i32
    return %arg0, %c0_i32, %c0_i32_0 : i32, i32, i32
  }
  func.func @transform_1(%arg0: i32) -> (i32, i32, i32) {
    %c0_i32 = arith.constant 0 : i32
    %c0_i32_0 = arith.constant 0 : i32
    %c0_i32_1 = arith.constant 0 : i32
    return %arg0, %c0_i32, %c0_i32_0 : i32, i32, i32
  }
  func.func @transform_2(%arg0: i32) -> (i32, i32, i32) {
    %c0_i32 = arith.constant 0 : i32
    %c0_i32_0 = arith.constant 0 : i32
    %c0_i32_1 = arith.constant 0 : i32
    return %arg0, %c0_i32, %c0_i32_0 : i32, i32, i32
  }
  func.func @transform_3(%arg0: i32) -> (i32, i32, i32) {
    %c0_i32 = arith.constant 0 : i32
    %c0_i32_0 = arith.constant 0 : i32
    %c0_i32_1 = arith.constant 0 : i32
    return %arg0, %c0_i32, %c0_i32_0 : i32, i32, i32
  }
  func.func @transform_4(%arg0: i32) -> (i32, i32, i32) {
    %c0_i32 = arith.constant 0 : i32
    %c0_i32_0 = arith.constant 0 : i32
    %c0_i32_1 = arith.constant 0 : i32
    return %arg0, %c0_i32, %c0_i32_0 : i32, i32, i32
  }
}

</mosaic_0001>

<bundles_post_ra>
// kernel: tpu_custom_call.1
= control target key start
LH: loop header
LB: loop body
LE: loop exit
PB: predicated region body
PF: predicated region fallthrough
CT: control target
= control target key end

     0   :  { %vm39_vm0 = vcmask 1043456   ;;  %v334_v2 = vmov 0.0|0.0   ;;  %vm335_vm1 = vmmov 1   ;;  %vm336_vm3 = vmmov 0   ;;  %s431_s0 = inlined_call_operand.vmem [shape: f32[1,1,12], index: 0, kind: input, shape index: {}]   ;;  %s432_s1 = inlined_call_operand.vmem [shape: f32[1,12,100], index: 1, kind: input, shape index: {}]   ;;  %s433_s2 = inlined_call_operand.vmem [shape: f32[1,100,6], index: 2, kind: input, shape index: {}]   ;;  %s434_s3 = inlined_call_operand.vmem [shape: u32[1,1,100], index: 3, kind: input, shape index: {}]   ;;  %s435_s4 = inlined_call_operand.hbm [shape: f32[1,1,6], index: 4, kind: output, shape index: {}]  }
   0x1   :  { %v20_v0 = vld [vmem:[%s432_s1] sm:$0xff]  ;;  %v21_v1 = vld [vmem:[%s432_s1 + $0x8] sm:$0xf]  ;;  %279 = vmatprep.subr.bf16.mxu0 %v334_v2  ;;  %vm281_vm2 = vmpackc.low %vm39_vm0, %vm335_vm1  ;;  %283 = vmatprep.subr.bf16.mxu1 %v334_v2  ;;  %v337_v5 = vmov 0.0  }
   0x2   :  { %v280_v3 = vpack.c.bf16 %v21_v1, %v20_v0  ;;  %v18_v4 = vld [vmem:[%s431_s0] sm:$0x1]  ;;  %247 = vmatprep.mubr.msk.f32.mxu0 %vm336_vm3, %v337_v5  ;;  %276 = vmatprep.mubr.msk.f32.mxu1 %vm336_vm3, %v337_v5 }
   0x3   :  { %v19_v6 = vmul.f32 0.28867513, %v18_v4 }
   0x4   :  { %9 = vsyncpa [#allocation3], 0  ;;  %282 = vmatpush3.bf16.msk.msra.mxu0 %vm281_vm2, %v280_v3  ;;  %vm35_vm4 = vcmask 97280   ;;  %v22_v7 = vld [vmem:[%s433_s2] sm:$0xff]  ;;  %v23_v8 = vld [vmem:[%s433_s2 + $0x8] sm:$0xff]  ;;  %vm113_vm5 = vcmask 811008  }
   0x5   :  { %v24_v9 = vld [vmem:[%s433_s2 + $0x10] sm:$0xff]  ;;  %v284_v10 = vpack.c.bf16 %v23_v8, %v22_v7  ;;  %v25_v11 = vld [vmem:[%s433_s2 + $0x18] sm:$0xff]  ;;  %v26_v13 = vld [vmem:[%s433_s2 + $0x20] sm:$0xff]  ;;  %vm126_vm7 = vcmask 818176   ;;  %vm206_vm8 = vcmask 40960  }
   0x6   :  { %v287_v12 = vpack.c.bf16 %v25_v11, %v24_v9  ;;  %v27_v14 = vld [vmem:[%s433_s2 + $0x28] sm:$0xff]  ;;  %v28_v19 = vld [vmem:[%s433_s2 + $0x30] sm:$0xff]  ;;  %v29_v20 = vld [vmem:[%s433_s2 + $0x38] sm:$0xff] }
   0x7   :  { %248 = vmatmul.mubr.msk.f32.vlgmr.msra.gmra.mrb[0].mxu0 %vm35_vm4, %v19_v6  ;;  %285 = vmatpush3.bf16.msra.mxu1 %v284_v10  ;;  %v290_v15 = vpack.c.bf16 %v27_v14, %v26_v13  ;;  %v293_v21 = vpack.c.bf16 %v29_v20, %v28_v19  ;;  %v30_v22 = vld [vmem:[%s433_s2 + $0x40] sm:$0xff]  ;;  %v31_v23 = vld [vmem:[%s433_s2 + $0x48] sm:$0xff]  ;;  %v32_v24 = vld [vmem:[%s433_s2 + $0x50] sm:$0xff] }
   0x8   :  { %286 = vmatprep.subr.bf16.mxu1 %v334_v2  ;;  %v296_v25 = vpack.c.bf16 %v31_v23, %v30_v22  ;;  %v33_v26 = vld [vmem:[%s433_s2 + $0x58] sm:$0xff]  ;;  %v34_v28 = vld [vmem:[%s433_s2 + $0x60] sm:$0xf]  ;;  %s338_s2 = smov [#allocation2]  }
   0x9   :  { %v299_v27 = vpack.c.bf16 %v33_v26, %v32_v24  ;;  %v123_v32 = vld [vmem:[%s434_s3] sm:$0x1]  ;;  %s214_s1 = sshll.u32 %s338_s2, 4  ;;  %s215_s1 = int_to_ptr.vmem [resolvable:$true] %s214_s1 }
   0xa   :  { %vm124_vm6 = vcmp.ge.u32.totalorder %v123_v32, 858993459  ;;  %s310_s3 = scalar_lea.vmem %s215_s1, 16  ;;  %s314_s21 = scalar_lea.vmem %s215_s1, 32 }
   0xb   :  { %288 = vmatpush3.bf16.msra.mxu1 %v287_v12  ;;  %p311_p0 = scmp.ne.s32.totalorder %s215_s1, %s310_s3  ;;  %p315_p1 = scmp.lt.s32.totalorder %s215_s1, %s215_s1 }
   0xc   :  { %289 = vmatprep.subr.bf16.mxu1 %v334_v2  ;;  %p316_p2 = scmp.lt.s32.totalorder %s314_s21, %s310_s3 }
   0xe   :  { %p317_p3 = por %p316_p2, %p315_p1 }
   0xf   :  { %291 = vmatpush3.bf16.msra.mxu1 %v290_v15 }
  0x10   :  { %292 = vmatprep.subr.bf16.mxu1 %v334_v2  ;;  %p318_p4 = pnand %p317_p3, %p311_p0 }
  0x13   :  { %294 = vmatpush3.bf16.msra.mxu1 %v293_v21 }
  0x14   :  { %295 = vmatprep.subr.bf16.mxu1 %v334_v2 }
  0x17   :  { %297 = vmatpush3.bf16.msra.mxu1 %v296_v25 }
  0x18   :  { %298 = vmatprep.subr.bf16.mxu1 %v334_v2 }
  0x1b   :  { %300 = vmatpush3.bf16.msra.mxu1 %v299_v27 }
  0x1c   :  { %274 = vmatprep.subr.mxu1 %v337_v5 }
  0x1f   :  { %275 = vmatpush3.msk.msra.mxu1 %vm39_vm0, %v34_v28 }
  0xda   :  { %v109_v16 = vpop.f32.mrb[0].mxu0 }
  0xdb   :  { %v249_v17 = vpop.f32.mrb[1].mxu0  ;;  %v114_v18 = vsel %vm113_vm5, %v109_v16, -inf }
  0xdc   :  { %115 = vmax.xlane.f32.xlu0 %v114_v18 }
 0x169   :  { %v116_v29 = vpop.xlane.xlu0 %115 }
 0x16a   :  { %v117_v30 = vsub.f32 %v109_v16, %v116_v29 }
 0x16c   :  { %v118_v31 = vmul.f32 1.442695, %v117_v30 }
 0x16e   :  { %306 = vpow2.f32 %v118_v31 }
 0x178   :  { %v307_v33 = vpop.eup %306 }
 0x179   :  { %v125_v34 = vsel %vm124_vm6, %v307_v33, 0.0  ;;  %v120_v35 = vsel %vm113_vm5, %v307_v33, 0.0 }
 0x17a   :  { %277 = vmatmul.mubr.msk.f32.vlgmr.msra.gmra.mrb[0].mxu1 %vm126_vm7, %v125_v34  ;;  %121 = vadd.xlane.f32.xlu0 %v120_v35 }
 0x207   :  { %v122_v36 = vpop.xlane.xlu0 %121 }
 0x208   :  { %308 = vrcp.f32 %v122_v36 }
 0x212   :  { %v309_v37 = vpop.eup %308 }
 0x213   :  { %v204_v38 = vmul.f32 1.25, %v309_v37 }
 0x24d   :  { %v199_v39 = vpop.f32.mrb[0].mxu1 }
 0x24e   :  { %v205_v40 = vmul.f32 %v204_v38, %v199_v39  ;;  %v278_v41 = vpop.f32.mrb[1].mxu1 }
 0x250   :  { %207 = vst.msk [vmem:[#allocation2] sm:$0x1] %vm206_vm8, %v205_v40 }
 0x251   :  { %321 = shalt.err (!%p318_p4)
}
 0x252   :  { %s322_s24 = scalar_lea.hbm %s435_s4, 16 }
 0x253   :  { %p323_p5 = scmp.ne.s32.totalorder %s435_s4, %s322_s24  ;;  %p326_p6 = scmp.lt.u32.totalorder %s322_s24, %s435_s4 }
 0x255   :  { %p328_p7 = pnand %p326_p6, %p323_p5 }
 0x257   :  { %331 = shalt.err (!%p328_p7)
}
 0x258   :  { %217 = dma.vmem_to_hbm [thread:$0]  %s215_s1, 16, %s435_s4, [#allocation3]  }
 0x259   :  { %332 = dma.done.wait [#allocation3], 16  }
 0x25a   :  { %333 = vsyncadd [#allocation3], 4294967280 }
 0x25b   :  { %221 = vsyncpa [#allocation3], 1 }

</bundles_post_ra>
